<compile_context>
chip_gen: v6e
topology: v6e:2x2x1
jax: 0.10.0
libtpu: 0.0.40
codegen_flags: <defaults>
</compile_context>

<pallas_src>
import functools

import jax
import jax.numpy as jnp
import numpy as np
from jax.experimental import pallas as pl
from jax.experimental.pallas import tpu as pltpu

_LANE = 128
_SUBLANE = 8
_VMEM_BUDGET_BYTES = 12 * 1024 * 1024   # per-step working-set target (all gens)
_VMEM_LIMIT_BYTES = 32 * 1024 * 1024    # <= physical VMEM on v5e/v6e/v7x
_TBC_CAP = 2048                         # max (B*C) rows per step
_TN_OUT_CAP = 2048                      # max output lanes per step


def _round_up(x: int, m: int) -> int:
    return ((x + m - 1) // m) * m


def _cdiv(a: int, b: int) -> int:
    return -(-a // b)


def _bilinear_weight_matrix_np(in_size: int, out_size: int) -> np.ndarray:
    """Interpolation matrix W (out_size, in_size) matching PyTorch
    nn.Upsample(mode='bilinear', align_corners=False). Host-side numpy
    (folded into the jit as a constant; no traced scatter/kron ops)."""
    scale = in_size / out_size
    src = (np.arange(out_size, dtype=np.float64) + 0.5) * scale - 0.5
    src = np.maximum(src, 0.0)                         # PyTorch clamps negatives
    i0 = np.minimum(np.floor(src).astype(np.int64), in_size - 1)
    i1 = np.minimum(i0 + 1, in_size - 1)
    lam1 = (src - i0).astype(np.float32)
    lam0 = (1.0 - lam1).astype(np.float32)
    w = np.zeros((out_size, in_size), np.float32)
    rows = np.arange(out_size)
    np.add.at(w, (rows, i0), lam0)
    np.add.at(w, (rows, i1), lam1)
    assert np.allclose(w.sum(axis=-1), 1.0, atol=1e-6)  # partition of unity
    return w


def _pick_lane_tile(n_lanes_pad: int, cap: int) -> int:
    """Largest multiple of 128 that divides n_lanes_pad (itself a multiple of
    128) and is <= cap, so last-dim blocks tile exactly (unmasked stores)."""
    k = n_lanes_pad // _LANE
    for m in range(min(k, cap // _LANE), 0, -1):
        if k % m == 0:
            return _LANE * m
    return _LANE


def _pick_row_tile(bc: int, n_in: int, tn_out: int, itemsize: int, sublane: int):
    """(tbc, bc_pad): rows per step sized from a VMEM budget, padding minimized.

    Double-buffered working set per step:
        2 * (tbc*n_in + tbc*tn_out + n_in*tn_out) * itemsize  <=  budget
    """
    avail = _VMEM_BUDGET_BYTES // (2 * itemsize) - n_in * tn_out
    rows_cap = max(sublane, avail // (n_in + tn_out)) if avail > 0 else sublane
    target = max(sublane, min(_TBC_CAP, (rows_cap // sublane) * sublane))
    if bc <= target:
        # Single row-step: full-extent block, no row padding, no junk writes.
        return bc, bc
    steps = _cdiv(bc, target)
    tbc = _round_up(_cdiv(bc, steps), sublane)   # pad waste < sublane rows/step
    return tbc, _round_up(bc, tbc)


def _upsample_kernel(x_ref, wkt_ref, o_ref):
    # x_ref:   (tbc, n_in)      rows of flattened (p1, p2) planes
    # wkt_ref: (n_in, tn_out)   Kronecker bilinear weight slice (transposed)
    # o_ref:   (tbc, tn_out)    lane-dense output slab (tn_out % 128 == 0)
    o_ref[...] = jnp.dot(
        x_ref[...], wkt_ref[...], preferred_element_type=jnp.float32
    ).astype(o_ref.dtype)


@functools.partial(jax.jit, static_argnums=(1, 2))
def upsample_forward(x: jnp.ndarray, image_size: int, patch_size):
    """x: (B, p1*p2, C) -> (B, C, image_size, image_size), PyTorch-equivalent.
    Output dtype follows the input dtype (use bf16 inputs for ~2x on this
    HBM-write-bound kernel)."""
    b, n, c = x.shape
    p1 = image_size // patch_size[0]
    p2 = image_size // patch_size[1]
    assert n == p1 * p2, "sequence length must equal p1*p2"
    h_out = p1 * patch_size[0]
    w_out = p2 * patch_size[1]
    n_in = p1 * p2
    n_out = h_out * w_out
    itemsize = x.dtype.itemsize
    sublane = _SUBLANE * max(1, 4 // max(itemsize, 1))   # 8 f32, 16 bf16

    # --- host-side (trace-time) weight constant: out = x_flat @ kron(Wh,Ww)^T
    wh = _bilinear_weight_matrix_np(p1, h_out)            # (H_out, p1)
    ww = _bilinear_weight_matrix_np(p2, w_out)            # (W_out, p2)
    wkt_np = np.kron(wh, ww).T                            # (n_in, n_out) f32
    n_out_pad = _round_up(n_out, _LANE)                   # keep stores unmasked
    if n_out_pad != n_out:
        wkt_np = np.pad(wkt_np, ((0, 0), (0, n_out_pad - n_out)))
    # Feed the MXU in the I/O dtype (bf16-native on v6e/v7x); accumulate f32.
    # TODO(synk): on v7x, casting operands to bf16 even for f32 I/O keeps the
    # kernel on the HBM roofline; kept in the I/O dtype to match PyTorch f32.
    wkt = jnp.asarray(wkt_np, dtype=x.dtype)
    # TODO(synk): the Kronecker weight is O(n_in*n_out); for large n_in switch
    # to the separable two-matmul form (W_h @ X @ W_w^T) instead.

    # Rearrange 'b (p1 p2) c -> (b c) (p1 p2)'  (row-major flatten of p1,p2).
    # TODO(synk): this transpose round-trips the (small, ~1/16 of output bytes)
    # input through HBM; folding it in-kernel needs an XLU transpose of a
    # (n_in, c_tile) block — skipped here to keep the lowering robust.
    bc = b * c
    x_flat = jnp.transpose(x, (0, 2, 1)).reshape(bc, n_in)

    # --- tile selection (VMEM-budget driven, padding-minimizing) ---
    tn_out = _pick_lane_tile(n_out_pad, _TN_OUT_CAP)
    tbc, bc_pad = _pick_row_tile(bc, n_in, tn_out, itemsize, sublane)
    # Megacore (v7x has 2 TensorCores): ensure >= 2 parallel grid steps.
    if (bc_pad // tbc) * (n_out_pad // tn_out) < 2:
        if tn_out % (2 * _LANE) == 0:
            tn_out //= 2
        elif bc >= 2 * sublane:
            tbc = _round_up(_cdiv(bc, 2), sublane)
            bc_pad = _round_up(bc, tbc)

    if bc_pad != bc:
        x_flat = jnp.pad(x_flat, ((0, bc_pad - bc), (0, 0)))

    grid = (bc_pad // tbc, n_out_pad // tn_out)

    cost = pl.CostEstimate(
        flops=2 * bc_pad * n_in * n_out_pad,
        transcendentals=0,
        bytes_accessed=(bc_pad * n_in + n_in * n_out_pad + bc_pad * n_out_pad)
        * itemsize,
    )

    out_flat = pl.pallas_call(
        _upsample_kernel,
        out_shape=jax.ShapeDtypeStruct((bc_pad, n_out_pad), x.dtype),
        grid_spec=pltpu.PrefetchScalarGridSpec(
            num_scalar_prefetch=0,
            grid=grid,
            in_specs=[
                # x tile is constant along the inner (j) axis -> fetched once.
                pl.BlockSpec((tbc, n_in), lambda i, j: (i, 0)),
                # Weight tile depends only on j; tiny relative to the output.
                pl.BlockSpec((n_in, tn_out), lambda i, j: (0, j)),
            ],
            out_specs=pl.BlockSpec((tbc, tn_out), lambda i, j: (i, j)),
        ),
        compiler_params=pltpu.CompilerParams(
            dimension_semantics=("parallel", "parallel"),
            vmem_limit_bytes=_VMEM_LIMIT_BYTES,
        ),
        cost_estimate=cost,
    )(x_flat, wkt)

    return out_flat[:bc, :n_out].reshape(b, c, h_out, w_out)


if __name__ == "__main__":
    # Module config: image_size=16, patch_size=(4, 4)  ->  p1=p2=4, seq=16
    image_size = 16
    patch_size = (4, 4)
    b, c = 2, 4
    p1 = image_size // patch_size[0]
    p2 = image_size // patch_size[1]
    seq = p1 * p2

    key = jax.random.PRNGKey(0)
    x = jax.random.normal(key, (b, seq, c), dtype=jnp.float32)

    # Pure-JAX reference: per-plane separable bilinear  W_h @ X @ W_w^T.
    wh = jnp.asarray(_bilinear_weight_matrix_np(p1, image_size))
    ww = jnp.asarray(_bilinear_weight_matrix_np(p2, image_size))
    x_planes = jnp.transpose(x, (0, 2, 1)).reshape(b, c, p1, p2)
    ref = jnp.einsum("ha,bcaw,vw->bchv", wh, x_planes, ww)

    # f32 path (PyTorch-matching numerics).
    out = jax.block_until_ready(upsample_forward(x, image_size, patch_size))
    assert out.shape == (b, c, image_size, image_size), out.shape
    assert out.dtype == x.dtype
    assert jnp.allclose(out, ref, atol=1e-5, rtol=1e-5), "f32 mismatch vs reference"

    # bf16 path: halves HBM write traffic on this write-bound kernel.
    x_bf16 = x.astype(jnp.bfloat16)
    out_bf16 = jax.block_until_ready(
        upsample_forward(x_bf16, image_size, patch_size))
    assert out_bf16.dtype == jnp.bfloat16
    assert jnp.allclose(out_bf16.astype(jnp.float32), ref, atol=5e-2, rtol=5e-2), \
        "bf16 mismatch vs reference"

    print("KERNEL_OK")
</pallas_src>

<mosaic_0001>
module attributes {stable_mosaic.version = 11 : i64} {
  func.func @_upsample_kernel(%arg0: i32, %arg1: i32, %arg2: memref<8x16xf32, #tpu.memory_space<vmem>>, %arg3: memref<16x128xf32, #tpu.memory_space<vmem>>, %arg4: memref<8x128xf32, #tpu.memory_space<vmem>>) attributes {dimension_semantics = [#tpu.dimension_semantics<parallel>, #tpu.dimension_semantics<parallel>], iteration_bounds = array<i64: 1, 2>, scalar_prefetch = 0 : i64, scratch_operands = 0 : i64, tpu.core_type = #tpu.core_type<tc>, window_params = [{transform_indices = @transform_0, window_bounds = array<i64: 8, 16>}, {transform_indices = @transform_1, window_bounds = array<i64: 16, 128>}, {transform_indices = @transform_2, window_bounds = array<i64: 8, 128>}]} {
    %c0 = arith.constant 0 : index
    %c0_0 = arith.constant 0 : index
    %0 = vector.load %arg2[%c0, %c0_0] : memref<8x16xf32, #tpu.memory_space<vmem>>, vector<8x16xf32>
    %c0_1 = arith.constant 0 : index
    %c0_2 = arith.constant 0 : index
    %1 = vector.load %arg3[%c0_1, %c0_2] : memref<16x128xf32, #tpu.memory_space<vmem>>, vector<16x128xf32>
    %cst = arith.constant dense<0.000000e+00> : vector<8x128xf32>
    %2 = tpu.matmul %0, %1, %cst {dimension_numbers = #tpu.dot_dimension_numbers<[1], [0], [0], [1], [0, 0, 1, 1], [], []>} : vector<8x16xf32>, vector<16x128xf32>, vector<8x128xf32> -> vector<8x128xf32>
    %c0_3 = arith.constant 0 : index
    %c0_4 = arith.constant 0 : index
    %3 = vector.load %arg4[%c0_3, %c0_4] : memref<8x128xf32, #tpu.memory_space<vmem>>, vector<8x128xf32>
    tpu.vector_store %arg4[%c0_3, %c0_4], %2 {strides = array<i32>} : memref<8x128xf32, #tpu.memory_space<vmem>>, vector<8x128xf32>,
    return
  }
  func.func @transform_0(%arg0: i32, %arg1: i32) -> (i32, i32) {
    %c0_i32 = arith.constant 0 : i32
    %c0_i32_0 = arith.constant 0 : i32
    return %arg0, %c0_i32 : i32, i32
  }
  func.func @transform_1(%arg0: i32, %arg1: i32) -> (i32, i32) {
    %c0_i32 = arith.constant 0 : i32
    %c0_i32_0 = arith.constant 0 : i32
    return %c0_i32, %arg1 : i32, i32
  }
  func.func @transform_2(%arg0: i32, %arg1: i32) -> (i32, i32) {
    %c0_i32 = arith.constant 0 : i32
    return %arg0, %arg1 : i32, i32
  }
}

</mosaic_0001>

<bundles_post_ra>
// kernel: upsample_forward.1
= control target key start
LH: loop header
LB: loop body
LE: loop exit
PB: predicated region body
PF: predicated region fallthrough
CT: control target
= control target key end

     0   :  { %7 = vsyncpa [#allocation3], 0  ;;  %s726_s0 = inlined_call_operand.hbm [shape: f32[8,16], index: 0, kind: input, shape index: {}]   ;;  %s727_s1 = inlined_call_operand.hbm [shape: f32[16,256], index: 1, kind: input, shape index: {}]   ;;  %s728_s2 = inlined_call_operand.vmem [shape: f32[8,256], index: 2, kind: output, shape index: {}]  }
   0x1   :  { %8 = vsyncpa [#allocation5], 0 }
   0x2   :  { %10 = vsyncpa [#allocation5 + $0x1], 0  ;;  %s611_s9 = smov 0   ;;  %s613_s10 = smov 0  }
   0x3   :  { %s615_s11 = smov 0   ;;  %s617_s12 = smov 0  }
   0x4   :  { %s619_s13 = smov 0   ;;  %s621_s14 = smov 0  }
   0x5 LB: > { %s384_s15 = sadd.s32 4294967295, %s587_s14   ;;  %s61_s16 = sadd.s32 1, %s575_s11  ;;  %s587_s14 = sphi %s621_s14, %s16_s14   ;;  %s583_s13 = sphi %s619_s13, %s741_s13   ;;  %s579_s12 = sphi %s617_s12, %s740_s12   ;;  %s575_s11 = sphi %s615_s11, %s739_s11   ;;  %s571_s10 = sphi %s613_s10, %s738_s10   ;;  %s567_s9 = sphi %s611_s9, %s737_s9  }
   0x6   : > { %p68_p0 = scmp.ne.s32.totalorder %s575_s11, %s571_s10  ;;  %p69_p1 = scmp.eq.s32.totalorder %s587_s14, 0 }
   0x7   : > { %p74_p2 = scmp.ne.s32.totalorder %s571_s10, %s567_s9  ;;  %p645_p3 = scmp.eq.s32.totalorder %s384_s15, 0 }
   0x8   : > { %p70_p4 = por %p69_p1, %p68_p0  ;;  %p386_p5 = scmp.ge.s32.totalorder %s587_s14, 1 }
   0x9   : > { %p652_p6 = por %p645_p3, %p74_p2  ;;  %p113_p7 = scmp.lt.s32.totalorder %s587_s14, 3 }
   0xa   : > { %s589_s20 = smov [#allocation2]   ;;  %p423_p10 = scmp.lt.s32.totalorder %s587_s14, 2 }
   0xb   : > { %s732_s18 = scalar_select %p652_p6, 1, 0 }
   0xc   : > { %p657_p8 = pnand %p386_p5, %p113_p7  ;;  %s128_s21 = sshll.u32 %s589_s20, 4  ;;  %s129_s21 = int_to_ptr.vmem [resolvable:$true] %s128_s21 }
   0xd   : > { %s139_s22 = sand.u32 1, %s575_s11   ;;  %p667_p12 = pnand %p423_p10, %p70_p4 }
   0xe   : > { %s733_s19 = scalar_select %p657_p8, 1, 0 }
   0xf   : > { %p414_p9 = pneg %p657_p8  ;;  %s490_s24 = scalar_lea.vmem %s129_s21, 128 }
  0x10   : > { %p491_p0 = scmp.ne.s32.totalorder %s129_s21, %s490_s24  ;;  %p498_p5 = scmp.lt.s32.totalorder %s129_s21, %s129_s21 }
  0x11   : > { %p415_p11 = pnand %p414_p9, %p645_p3  ;;  %p499_p7 = scmp.lt.s32.totalorder %s490_s24, %s490_s24 }
  0x13   : > { %p481_p13 = pneg %p415_p11  ;;  %p500_p6 = por %p499_p7, %p498_p5 }
  0x15   : > { %p493_p1 = pnand %p491_p0, %p481_p13 }
  0x17   : > { %p494_p2 = pneg %p493_p1 }
  0x19   : > { %p501_p8 = pnand %p500_p6, %p494_p2 }
  0x1b   : > { %504 = shalt.err (!%p501_p8)
}
  0x1c   : > { %417 = dma.hbm_to_vmem [thread:$0]  (!%p415_p11), %s726_s0, 128, %s129_s21, [#allocation3]  }
  0x1d   : > { %s25_s27 = sadd.s32 1, %s583_s13  ;;  %s389_s28 = sshll.u32 %s139_s22, 4 }
  0x1e   : > { %p26_p4 = scmp.ge.s32.totalorder %s25_s27, 2  ;;  %s390_s29 = sshll.u32 %s583_s13, 7 }
  0x1f   : > { %s143_s30 = scalar_lea.vmem [#allocation4], %s389_s28  ;;  %s148_s6 = scalar_lea.hbm %s727_s1, %s390_s29 }
  0x20   : > { %s149_s3 = sshll.u32 %s143_s30, 4  ;;  %s743_s27 = smov (%p26_p4, %s25_s27), 0  ;;  %s150_s3 = int_to_ptr.vmem [resolvable:$true] %s149_s3 }
  0x21   : > { %s58_s7 = ssub.s32 %s583_s13, %s743_s27  ;;  %s140_s9 = scalar_lea.sflag [#allocation5], %s139_s22 }
  0x22   : > { %p59_p6 = scmp.eq.s32.totalorder %s58_s7, 0  ;;  %p507_p8 = pneg %p667_p12 }
  0x23   : > { %s518_s15 = scalar_lea.vmem %s150_s3, 256  ;;  %s590_s20 = smov [#allocation4]  }
  0x24   : > { %s686_s8 = scalar_select %p59_p6, %s575_s11, %s61_s16  }
  0x25   : > { %p519_p9 = scmp.ne.s32.totalorder %s150_s3, %s518_s15  ;;  %s523_s21 = sshll.u32 %s590_s20, 4  ;;  %s524_s21 = int_to_ptr.vmem [resolvable:$false] %s523_s21 }
  0x26   : > { %s525_s24 = scalar_lea.vmem %s524_s21, 512  ;;  %p526_p13 = scmp.lt.s32.totalorder %s150_s3, %s524_s21 }
  0x27   : > { %p521_p10 = pnand %p519_p9, %p507_p8  ;;  %p527_p0 = scmp.lt.s32.totalorder %s525_s24, %s518_s15 }
  0x29   : > { %p522_p11 = pneg %p521_p10  ;;  %p528_p1 = por %p527_p0, %p526_p13 }
  0x2b   : > { %p529_p2 = pnand %p528_p1, %p522_p11 }
  0x2d   : > { %532 = shalt.err (!%p529_p2)
}
  0x2e   : > { %s591_s25 = smov 256   ;;  %s592_s16 = smov 128  }
  0x2f   : > { %s593_s26 = smov 8   ;;  %p735_p5 = scmp.ne.s32.totalorder %s733_s19, 0 }
  0x30   : > { %421 = dma.hbm_to_vmem [thread:$0]  (!%p667_p12), %s148_s6, 256, %s150_s3, %s140_s9, %s591_s25, %s592_s16, %s593_s26  }
  0x31   : > { %161 = sbr.rel (%p735_p5) target bundleno = 259 (0x103), region = 28 }
  0x36   : > { %558 = dma.done.wait (%p645_p3), [#allocation3], 128  }
  0x37   : > { %560 = vsyncadd (%p645_p3), [#allocation3], 4294967168  ;;  %s167_s22 = sand.u32 1, %s571_s10   ;;  %p736_p7 = scmp.ne.s32.totalorder %s732_s18, 0 }
  0x38   : > { %s393_s28 = sshll.u32 %s167_s22, 4  ;;  %s168_s29 = scalar_lea.sflag [#allocation5], %s167_s22 }
  0x39   : > { %s171_s30 = scalar_lea.vmem [#allocation4], %s393_s28 }
  0x3a   : > { %562 = dma.done.wait (%p736_p7), %s168_s29, 256  }
  0x3b   : > { %564 = vsyncadd (%p736_p7), %s168_s29, 4294967040  ;;  %v594_v0 = vmov 0.0   ;;  %vm595_vm0 = vmmov 0   ;;  %v205_v1 = vld [vmem:[%s171_s30 + $0x8] sm:$0xff]  ;;  %v204_v2 = vld [vmem:[%s171_s30] sm:$0xff]  ;;  %vm206_vm1 = vcmask 130048  }
  0x3c   : > { %401 = vmatprep.subr.mxu0 %v594_v0  ;;  %405 = vmatprep.mubr.msk.f32.mxu0 %vm595_vm0, %v594_v0  ;;  %v203_v3 = vld [vmem:[#allocation2] sm:$0xff]  ;;  %p197_p3 = scmp.lt.s32.totalorder %s579_s12, 1 }
  0x3d   : > { %402 = vmatpush3.msra.mxu0 %v205_v1 }
  0x3e   : > { %403 = vmatprep.subr.mxu0 %v594_v0  ;;  %s745_s12 = smov (!%p197_p3, %s579_s12), 1 }
  0x3f   : > { %404 = vmatpush3.msra.mxu0 %v204_v2  ;;  %s394_s17 = sshll.u32 %s745_s12, 3 }
  0x40   : > { %406 = vmatmul.mubr.msk.f32.vlgmr.msra.gmra.mxu0 %vm206_vm1, %v203_v3  ;;  %s202_s23 = scalar_lea.vmem %s728_s2, %s394_s17 }
 0x100   : > { %v276_v4 = vpop.f32.mrf.mxu0 }
 0x101   : > { %280 = vst [vmem:[%s202_s23] sm:$0xff] %v276_v4 }
 0x102   : > { %v407_v5 = vpop.f32.mrf.mxu0 }
 0x103 PF: > { %s16_s14 = sadd.s32 1, %s587_s14   ;;  %s737_s9 = smov %s571_s10 }
 0x104   : > { %p13_p12 = scmp.ge.s32.totalorder %s16_s14, 4   ;;  %s738_s10 = smov %s575_s11 }
 0x105   : > { %s739_s11 = smov %s686_s8  ;;  %s740_s12 = smov %s583_s13 }
 0x106   : > { %s741_s13 = smov %s743_s27  ;;  %15 = sbr.rel (!%p13_p12) target bundleno = 5 (0x5), region = 74 }
 0x10b   :  { %308 = vsyncpa [#allocation3], 1 }
 0x10c   :  { %310 = vsyncpa [#allocation3 + $0x1], 1 }
 0x10d   :  { %311 = vsyncpa [#allocation5], 1 }
 0x10e   :  { %313 = vsyncpa [#allocation5 + $0x1], 1 }

</bundles_post_ra>
